<compile_context>
chip_gen: v6e
topology: v6e:2x2x1
jax: 0.10.0
libtpu: 0.0.40
codegen_flags: <defaults>
</compile_context>

<pallas_src>
import functools

import jax
import jax.numpy as jnp
from jax.experimental import pallas as pl
from jax.experimental.pallas import tpu as pltpu


def _rollout_kernel(x0_ref, noise_ref,
                    w1_ref, b1_ref, w2_ref, b2_ref, w3_ref, b3_ref,
                    resid_ref,
                    *, sigma: float, T: int, F: int):
    B = x0_ref.shape[0]
    H1 = w1_ref.shape[1]
    H2 = w2_ref.shape[1]

    # Hoist weight loads and bias broadcasts out of the time loop (loaded once,
    # reused by every unrolled step).
    w1 = w1_ref[...]
    w2 = w2_ref[...]
    w3 = w3_ref[...]
    b1 = jnp.broadcast_to(b1_ref[...], (B, H1))
    b2 = jnp.broadcast_to(b2_ref[...], (B, H2))
    b3 = jnp.broadcast_to(b3_ref[...], (B, F))

    # Load ALL noise once (lane-dense (B, T*F)) and pre-scale by sigma: one wide
    # load + one wide VPU multiply instead of T tiny sublane-strided loads and
    # scalar-broadcast multiplies on the serial recurrence path.
    n_scaled = noise_ref[...] * sigma                 # (B, T*F)

    x = x0_ref[...]                                   # (B, F) running state, in vregs

    # T is a small static constant -> fully unrolled at trace time, giving the
    # scheduler visibility across steps (next step's first MXU push overlaps the
    # current step's VPU tail).
    preds = []
    for t in range(T):
        # f_net(x): Linear -> ReLU -> Linear -> ReLU -> Linear (MXU + VPU, f32 acc)
        h1 = jnp.maximum(
            jnp.dot(x, w1, preferred_element_type=jnp.float32) + b1, 0.0)
        h2 = jnp.maximum(
            jnp.dot(h1, w2, preferred_element_type=jnp.float32) + b2, 0.0)
        f_pred = jnp.dot(h2, w3, preferred_element_type=jnp.float32) + b3

        # Defer the writeback: keep f_pred in vregs and advance the state.
        preds.append(f_pred)
        x = x + f_pred + n_scaled[:, t * F:(t + 1) * F]

    # Single lane-dense, unmasked store of the whole (B, T*F) output block
    # (one HBM flush at the end of the single grid step).
    resid_ref[...] = jnp.concatenate(preds, axis=-1)


def neural_autoregressive_forward(x, params, noises, sigma):
    """x: (B, L, F) f32; noises: (B, L-1, F) f32 (pre-sampled).
    Returns (residual_predictions, noises), each (B, L-1, F)."""
    B, L, F = x.shape
    T = L - 1
    w1, b1, w2, b2, w3, b3 = params
    H1 = w1.shape[1]
    H2 = w2.shape[1]

    x0 = x[:, 0, :]                                   # (B, F)
    # Contiguous reshape only (no transpose): present noise lane-dense.
    noises_flat = noises.reshape(B, T * F)

    kernel = functools.partial(_rollout_kernel, sigma=float(sigma), T=T, F=F)

    resid_flat = pl.pallas_call(
        kernel,
        out_shape=jax.ShapeDtypeStruct((B, T * F), jnp.float32),
        grid_spec=pl.GridSpec(
            grid=(1,),                                # single invocation, loop in-kernel
            in_specs=[
                pl.BlockSpec((B, F), lambda i: (0, 0)),        # x0
                pl.BlockSpec((B, T * F), lambda i: (0, 0)),    # all noise, lane-dense
                pl.BlockSpec((F, H1), lambda i: (0, 0)),       # w1
                pl.BlockSpec((1, H1), lambda i: (0, 0)),       # b1
                pl.BlockSpec((H1, H2), lambda i: (0, 0)),      # w2
                pl.BlockSpec((1, H2), lambda i: (0, 0)),       # b2
                pl.BlockSpec((H2, F), lambda i: (0, 0)),       # w3
                pl.BlockSpec((1, F), lambda i: (0, 0)),        # b3
            ],
            out_specs=pl.BlockSpec((B, T * F), lambda i: (0, 0)),  # single flush
        ),
        compiler_params=pltpu.CompilerParams(
            dimension_semantics=("arbitrary",),
        ),
    )(x0, noises_flat, w1, b1, w2, b2, w3, b3)

    return resid_flat.reshape(B, T, F), noises


def _reference_forward(x, params, noises, sigma):
    """Pure-JAX reference of the PyTorch forward (given the same noise draws)."""
    w1, b1, w2, b2, w3, b3 = params
    B, L, F = x.shape

    def f_net(v):
        h = jnp.maximum(v @ w1 + b1[0], 0.0)
        h = jnp.maximum(h @ w2 + b2[0], 0.0)
        return h @ w3 + b3[0]

    x_cur = x[:, 0, :]
    preds = []
    for t in range(L - 1):
        f_pred = f_net(x_cur)
        preds.append(f_pred)
        x_cur = x_cur + f_pred + sigma * noises[:, t, :]
    return jnp.stack(preds, axis=1)


def init_params(key, features_dim, hidden=64):
    """Deterministic init matching nn.Linear shapes (stored transposed: (in, out))."""
    k1, k2, k3, k4, k5, k6 = jax.random.split(key, 6)

    def lin(kw, kb, fan_in, fan_out):
        bound = 1.0 / jnp.sqrt(fan_in)
        w = jax.random.uniform(kw, (fan_in, fan_out), jnp.float32, -bound, bound)
        b = jax.random.uniform(kb, (1, fan_out), jnp.float32, -bound, bound)
        return w, b

    w1, b1 = lin(k1, k2, features_dim, hidden)
    w2, b2 = lin(k3, k4, hidden, hidden)
    w3, b3 = lin(k5, k6, hidden, features_dim)
    return (w1, b1, w2, b2, w3, b3)


if __name__ == "__main__":
    B, L, F = 4, 8, 16
    sigma = 0.01

    key = jax.random.PRNGKey(0)
    kx, kp, kn = jax.random.split(key, 3)

    x = jax.random.normal(kx, (B, L, F), dtype=jnp.float32)
    params = init_params(kp, F, hidden=64)
    # Pre-sample the rollout noise (torch.randn equivalent) as glue outside the kernel.
    noises = jax.random.normal(kn, (B, L - 1, F), dtype=jnp.float32)

    resid_pred, noises_out = neural_autoregressive_forward(x, params, noises, sigma)
    resid_pred = jax.block_until_ready(resid_pred)

    ref = _reference_forward(x, params, noises, sigma)
    assert resid_pred.shape == (B, L - 1, F)
    assert noises_out.shape == (B, L - 1, F)
    assert jnp.allclose(resid_pred, ref, rtol=1e-5, atol=1e-5)

    print("KERNEL_OK")
</pallas_src>

<mosaic_0001>
module attributes {stable_mosaic.version = 11 : i64} {
  func.func @_rollout_kernel(%arg0: i32, %arg1: memref<4x16xf32, #tpu.memory_space<vmem>>, %arg2: memref<4x112xf32, #tpu.memory_space<vmem>>, %arg3: memref<16x64xf32, #tpu.memory_space<vmem>>, %arg4: memref<1x64xf32, #tpu.memory_space<vmem>>, %arg5: memref<64x64xf32, #tpu.memory_space<vmem>>, %arg6: memref<1x64xf32, #tpu.memory_space<vmem>>, %arg7: memref<64x16xf32, #tpu.memory_space<vmem>>, %arg8: memref<1x16xf32, #tpu.memory_space<vmem>>, %arg9: memref<4x112xf32, #tpu.memory_space<vmem>>) attributes {dimension_semantics = [#tpu.dimension_semantics<arbitrary>], iteration_bounds = array<i64: 1>, scalar_prefetch = 0 : i64, scratch_operands = 0 : i64, tpu.core_type = #tpu.core_type<tc>, window_params = [{pipeline_mode = #tpu.pipeline_mode<synchronous>, transform_indices = @transform_0, window_bounds = array<i64: 4, 16>}, {pipeline_mode = #tpu.pipeline_mode<synchronous>, transform_indices = @transform_1, window_bounds = array<i64: 4, 112>}, {pipeline_mode = #tpu.pipeline_mode<synchronous>, transform_indices = @transform_2, window_bounds = array<i64: 16, 64>}, {pipeline_mode = #tpu.pipeline_mode<synchronous>, transform_indices = @transform_3, window_bounds = array<i64: 1, 64>}, {pipeline_mode = #tpu.pipeline_mode<synchronous>, transform_indices = @transform_4, window_bounds = array<i64: 64, 64>}, {pipeline_mode = #tpu.pipeline_mode<synchronous>, transform_indices = @transform_5, window_bounds = array<i64: 1, 64>}, {pipeline_mode = #tpu.pipeline_mode<synchronous>, transform_indices = @transform_6, window_bounds = array<i64: 64, 16>}, {pipeline_mode = #tpu.pipeline_mode<synchronous>, transform_indices = @transform_7, window_bounds = array<i64: 1, 16>}, {pipeline_mode = #tpu.pipeline_mode<synchronous>, transform_indices = @transform_8, window_bounds = array<i64: 4, 112>}]} {
    %c0 = arith.constant 0 : index
    %c0_0 = arith.constant 0 : index
    %0 = vector.load %arg3[%c0, %c0_0] : memref<16x64xf32, #tpu.memory_space<vmem>>, vector<16x64xf32>
    %c0_1 = arith.constant 0 : index
    %c0_2 = arith.constant 0 : index
    %1 = vector.load %arg5[%c0_1, %c0_2] : memref<64x64xf32, #tpu.memory_space<vmem>>, vector<64x64xf32>
    %c0_3 = arith.constant 0 : index
    %c0_4 = arith.constant 0 : index
    %2 = vector.load %arg7[%c0_3, %c0_4] : memref<64x16xf32, #tpu.memory_space<vmem>>, vector<64x16xf32>
    %c0_5 = arith.constant 0 : index
    %c0_6 = arith.constant 0 : index
    %3 = vector.load %arg4[%c0_5, %c0_6] : memref<1x64xf32, #tpu.memory_space<vmem>>, vector<1x64xf32>
    %4 = vector.shape_cast %3 : vector<1x64xf32> to vector<1x64xf32>
    %5 = vector.broadcast %4 : vector<1x64xf32> to vector<4x64xf32>
    %c0_7 = arith.constant 0 : index
    %c0_8 = arith.constant 0 : index
    %6 = vector.load %arg6[%c0_7, %c0_8] : memref<1x64xf32, #tpu.memory_space<vmem>>, vector<1x64xf32>
    %7 = vector.shape_cast %6 : vector<1x64xf32> to vector<1x64xf32>
    %8 = vector.broadcast %7 : vector<1x64xf32> to vector<4x64xf32>
    %c0_9 = arith.constant 0 : index
    %c0_10 = arith.constant 0 : index
    %9 = vector.load %arg8[%c0_9, %c0_10] : memref<1x16xf32, #tpu.memory_space<vmem>>, vector<1x16xf32>
    %10 = vector.shape_cast %9 : vector<1x16xf32> to vector<1x16xf32>
    %11 = vector.broadcast %10 : vector<1x16xf32> to vector<4x16xf32>
    %c0_11 = arith.constant 0 : index
    %c0_12 = arith.constant 0 : index
    %12 = vector.load %arg2[%c0_11, %c0_12] : memref<4x112xf32, #tpu.memory_space<vmem>>, vector<4x112xf32>
    %cst = arith.constant 0.00999999977 : f32
    %13 = vector.broadcast %cst : f32 to vector<4x112xf32>
    %14 = arith.mulf %12, %13 : vector<4x112xf32>
    %c0_13 = arith.constant 0 : index
    %c0_14 = arith.constant 0 : index
    %15 = vector.load %arg1[%c0_13, %c0_14] : memref<4x16xf32, #tpu.memory_space<vmem>>, vector<4x16xf32>
    %cst_15 = arith.constant dense<0.000000e+00> : vector<4x64xf32>
    %16 = tpu.matmul %15, %0, %cst_15 {dimension_numbers = #tpu.dot_dimension_numbers<[1], [0], [0], [1], [0, 0, 1, 1], [], []>} : vector<4x16xf32>, vector<16x64xf32>, vector<4x64xf32> -> vector<4x64xf32>
    %17 = arith.addf %16, %5 : vector<4x64xf32>
    %cst_16 = arith.constant 0.000000e+00 : f32
    %18 = vector.broadcast %cst_16 : f32 to vector<4x64xf32>
    %19 = arith.maximumf %17, %18 : vector<4x64xf32>
    %cst_17 = arith.constant dense<0.000000e+00> : vector<4x64xf32>
    %20 = tpu.matmul %19, %1, %cst_17 {dimension_numbers = #tpu.dot_dimension_numbers<[1], [0], [0], [1], [0, 0, 1, 1], [], []>} : vector<4x64xf32>, vector<64x64xf32>, vector<4x64xf32> -> vector<4x64xf32>
    %21 = arith.addf %20, %8 : vector<4x64xf32>
    %cst_18 = arith.constant 0.000000e+00 : f32
    %22 = vector.broadcast %cst_18 : f32 to vector<4x64xf32>
    %23 = arith.maximumf %21, %22 : vector<4x64xf32>
    %cst_19 = arith.constant dense<0.000000e+00> : vector<4x16xf32>
    %24 = tpu.matmul %23, %2, %cst_19 {dimension_numbers = #tpu.dot_dimension_numbers<[1], [0], [0], [1], [0, 0, 1, 1], [], []>} : vector<4x64xf32>, vector<64x16xf32>, vector<4x16xf32> -> vector<4x16xf32>
    %25 = arith.addf %24, %11 : vector<4x16xf32>
    %26 = arith.addf %15, %25 : vector<4x16xf32>
    %27 = vector.extract_strided_slice %14 {offsets = [0, 0], sizes = [4, 16], strides = [1, 1]} : vector<4x112xf32> to vector<4x16xf32>
    %28 = arith.addf %26, %27 : vector<4x16xf32>
    %cst_20 = arith.constant dense<0.000000e+00> : vector<4x64xf32>
    %29 = tpu.matmul %28, %0, %cst_20 {dimension_numbers = #tpu.dot_dimension_numbers<[1], [0], [0], [1], [0, 0, 1, 1], [], []>} : vector<4x16xf32>, vector<16x64xf32>, vector<4x64xf32> -> vector<4x64xf32>
    %30 = arith.addf %29, %5 : vector<4x64xf32>
    %cst_21 = arith.constant 0.000000e+00 : f32
    %31 = vector.broadcast %cst_21 : f32 to vector<4x64xf32>
    %32 = arith.maximumf %30, %31 : vector<4x64xf32>
    %cst_22 = arith.constant dense<0.000000e+00> : vector<4x64xf32>
    %33 = tpu.matmul %32, %1, %cst_22 {dimension_numbers = #tpu.dot_dimension_numbers<[1], [0], [0], [1], [0, 0, 1, 1], [], []>} : vector<4x64xf32>, vector<64x64xf32>, vector<4x64xf32> -> vector<4x64xf32>
    %34 = arith.addf %33, %8 : vector<4x64xf32>
    %cst_23 = arith.constant 0.000000e+00 : f32
    %35 = vector.broadcast %cst_23 : f32 to vector<4x64xf32>
    %36 = arith.maximumf %34, %35 : vector<4x64xf32>
    %cst_24 = arith.constant dense<0.000000e+00> : vector<4x16xf32>
    %37 = tpu.matmul %36, %2, %cst_24 {dimension_numbers = #tpu.dot_dimension_numbers<[1], [0], [0], [1], [0, 0, 1, 1], [], []>} : vector<4x64xf32>, vector<64x16xf32>, vector<4x16xf32> -> vector<4x16xf32>
    %38 = arith.addf %37, %11 : vector<4x16xf32>
    %39 = arith.addf %28, %38 : vector<4x16xf32>
    %40 = vector.extract_strided_slice %14 {offsets = [0, 16], sizes = [4, 16], strides = [1, 1]} : vector<4x112xf32> to vector<4x16xf32>
    %41 = arith.addf %39, %40 : vector<4x16xf32>
    %cst_25 = arith.constant dense<0.000000e+00> : vector<4x64xf32>
    %42 = tpu.matmul %41, %0, %cst_25 {dimension_numbers = #tpu.dot_dimension_numbers<[1], [0], [0], [1], [0, 0, 1, 1], [], []>} : vector<4x16xf32>, vector<16x64xf32>, vector<4x64xf32> -> vector<4x64xf32>
    %43 = arith.addf %42, %5 : vector<4x64xf32>
    %cst_26 = arith.constant 0.000000e+00 : f32
    %44 = vector.broadcast %cst_26 : f32 to vector<4x64xf32>
    %45 = arith.maximumf %43, %44 : vector<4x64xf32>
    %cst_27 = arith.constant dense<0.000000e+00> : vector<4x64xf32>
    %46 = tpu.matmul %45, %1, %cst_27 {dimension_numbers = #tpu.dot_dimension_numbers<[1], [0], [0], [1], [0, 0, 1, 1], [], []>} : vector<4x64xf32>, vector<64x64xf32>, vector<4x64xf32> -> vector<4x64xf32>
    %47 = arith.addf %46, %8 : vector<4x64xf32>
    %cst_28 = arith.constant 0.000000e+00 : f32
    %48 = vector.broadcast %cst_28 : f32 to vector<4x64xf32>
    %49 = arith.maximumf %47, %48 : vector<4x64xf32>
    %cst_29 = arith.constant dense<0.000000e+00> : vector<4x16xf32>
    %50 = tpu.matmul %49, %2, %cst_29 {dimension_numbers = #tpu.dot_dimension_numbers<[1], [0], [0], [1], [0, 0, 1, 1], [], []>} : vector<4x64xf32>, vector<64x16xf32>, vector<4x16xf32> -> vector<4x16xf32>
    %51 = arith.addf %50, %11 : vector<4x16xf32>
    %52 = arith.addf %41, %51 : vector<4x16xf32>
    %53 = vector.extract_strided_slice %14 {offsets = [0, 32], sizes = [4, 16], strides = [1, 1]} : vector<4x112xf32> to vector<4x16xf32>
    %54 = arith.addf %52, %53 : vector<4x16xf32>
    %cst_30 = arith.constant dense<0.000000e+00> : vector<4x64xf32>
    %55 = tpu.matmul %54, %0, %cst_30 {dimension_numbers = #tpu.dot_dimension_numbers<[1], [0], [0], [1], [0, 0, 1, 1], [], []>} : vector<4x16xf32>, vector<16x64xf32>, vector<4x64xf32> -> vector<4x64xf32>
    %56 = arith.addf %55, %5 : vector<4x64xf32>
    %cst_31 = arith.constant 0.000000e+00 : f32
    %57 = vector.broadcast %cst_31 : f32 to vector<4x64xf32>
    %58 = arith.maximumf %56, %57 : vector<4x64xf32>
    %cst_32 = arith.constant dense<0.000000e+00> : vector<4x64xf32>
    %59 = tpu.matmul %58, %1, %cst_32 {dimension_numbers = #tpu.dot_dimension_numbers<[1], [0], [0], [1], [0, 0, 1, 1], [], []>} : vector<4x64xf32>, vector<64x64xf32>, vector<4x64xf32> -> vector<4x64xf32>
    %60 = arith.addf %59, %8 : vector<4x64xf32>
    %cst_33 = arith.constant 0.000000e+00 : f32
    %61 = vector.broadcast %cst_33 : f32 to vector<4x64xf32>
    %62 = arith.maximumf %60, %61 : vector<4x64xf32>
    %cst_34 = arith.constant dense<0.000000e+00> : vector<4x16xf32>
    %63 = tpu.matmul %62, %2, %cst_34 {dimension_numbers = #tpu.dot_dimension_numbers<[1], [0], [0], [1], [0, 0, 1, 1], [], []>} : vector<4x64xf32>, vector<64x16xf32>, vector<4x16xf32> -> vector<4x16xf32>
    %64 = arith.addf %63, %11 : vector<4x16xf32>
    %65 = arith.addf %54, %64 : vector<4x16xf32>
    %66 = vector.extract_strided_slice %14 {offsets = [0, 48], sizes = [4, 16], strides = [1, 1]} : vector<4x112xf32> to vector<4x16xf32>
    %67 = arith.addf %65, %66 : vector<4x16xf32>
    %cst_35 = arith.constant dense<0.000000e+00> : vector<4x64xf32>
    %68 = tpu.matmul %67, %0, %cst_35 {dimension_numbers = #tpu.dot_dimension_numbers<[1], [0], [0], [1], [0, 0, 1, 1], [], []>} : vector<4x16xf32>, vector<16x64xf32>, vector<4x64xf32> -> vector<4x64xf32>
    %69 = arith.addf %68, %5 : vector<4x64xf32>
    %cst_36 = arith.constant 0.000000e+00 : f32
    %70 = vector.broadcast %cst_36 : f32 to vector<4x64xf32>
    %71 = arith.maximumf %69, %70 : vector<4x64xf32>
    %cst_37 = arith.constant dense<0.000000e+00> : vector<4x64xf32>
    %72 = tpu.matmul %71, %1, %cst_37 {dimension_numbers = #tpu.dot_dimension_numbers<[1], [0], [0], [1], [0, 0, 1, 1], [], []>} : vector<4x64xf32>, vector<64x64xf32>, vector<4x64xf32> -> vector<4x64xf32>
    %73 = arith.addf %72, %8 : vector<4x64xf32>
    %cst_38 = arith.constant 0.000000e+00 : f32
    %74 = vector.broadcast %cst_38 : f32 to vector<4x64xf32>
    %75 = arith.maximumf %73, %74 : vector<4x64xf32>
    %cst_39 = arith.constant dense<0.000000e+00> : vector<4x16xf32>
    %76 = tpu.matmul %75, %2, %cst_39 {dimension_numbers = #tpu.dot_dimension_numbers<[1], [0], [0], [1], [0, 0, 1, 1], [], []>} : vector<4x64xf32>, vector<64x16xf32>, vector<4x16xf32> -> vector<4x16xf32>
    %77 = arith.addf %76, %11 : vector<4x16xf32>
    %78 = arith.addf %67, %77 : vector<4x16xf32>
    %79 = vector.extract_strided_slice %14 {offsets = [0, 64], sizes = [4, 16], strides = [1, 1]} : vector<4x112xf32> to vector<4x16xf32>
    %80 = arith.addf %78, %79 : vector<4x16xf32>
    %cst_40 = arith.constant dense<0.000000e+00> : vector<4x64xf32>
    %81 = tpu.matmul %80, %0, %cst_40 {dimension_numbers = #tpu.dot_dimension_numbers<[1], [0], [0], [1], [0, 0, 1, 1], [], []>} : vector<4x16xf32>, vector<16x64xf32>, vector<4x64xf32> -> vector<4x64xf32>
    %82 = arith.addf %81, %5 : vector<4x64xf32>
    %cst_41 = arith.constant 0.000000e+00 : f32
    %83 = vector.broadcast %cst_41 : f32 to vector<4x64xf32>
    %84 = arith.maximumf %82, %83 : vector<4x64xf32>
    %cst_42 = arith.constant dense<0.000000e+00> : vector<4x64xf32>
    %85 = tpu.matmul %84, %1, %cst_42 {dimension_numbers = #tpu.dot_dimension_numbers<[1], [0], [0], [1], [0, 0, 1, 1], [], []>} : vector<4x64xf32>, vector<64x64xf32>, vector<4x64xf32> -> vector<4x64xf32>
    %86 = arith.addf %85, %8 : vector<4x64xf32>
    %cst_43 = arith.constant 0.000000e+00 : f32
    %87 = vector.broadcast %cst_43 : f32 to vector<4x64xf32>
    %88 = arith.maximumf %86, %87 : vector<4x64xf32>
    %cst_44 = arith.constant dense<0.000000e+00> : vector<4x16xf32>
    %89 = tpu.matmul %88, %2, %cst_44 {dimension_numbers = #tpu.dot_dimension_numbers<[1], [0], [0], [1], [0, 0, 1, 1], [], []>} : vector<4x64xf32>, vector<64x16xf32>, vector<4x16xf32> -> vector<4x16xf32>
    %90 = arith.addf %89, %11 : vector<4x16xf32>
    %91 = arith.addf %80, %90 : vector<4x16xf32>
    %92 = vector.extract_strided_slice %14 {offsets = [0, 80], sizes = [4, 16], strides = [1, 1]} : vector<4x112xf32> to vector<4x16xf32>
    %93 = arith.addf %91, %92 : vector<4x16xf32>
    %cst_45 = arith.constant dense<0.000000e+00> : vector<4x64xf32>
    %94 = tpu.matmul %93, %0, %cst_45 {dimension_numbers = #tpu.dot_dimension_numbers<[1], [0], [0], [1], [0, 0, 1, 1], [], []>} : vector<4x16xf32>, vector<16x64xf32>, vector<4x64xf32> -> vector<4x64xf32>
    %95 = arith.addf %94, %5 : vector<4x64xf32>
    %cst_46 = arith.constant 0.000000e+00 : f32
    %96 = vector.broadcast %cst_46 : f32 to vector<4x64xf32>
    %97 = arith.maximumf %95, %96 : vector<4x64xf32>
    %cst_47 = arith.constant dense<0.000000e+00> : vector<4x64xf32>
    %98 = tpu.matmul %97, %1, %cst_47 {dimension_numbers = #tpu.dot_dimension_numbers<[1], [0], [0], [1], [0, 0, 1, 1], [], []>} : vector<4x64xf32>, vector<64x64xf32>, vector<4x64xf32> -> vector<4x64xf32>
    %99 = arith.addf %98, %8 : vector<4x64xf32>
    %cst_48 = arith.constant 0.000000e+00 : f32
    %100 = vector.broadcast %cst_48 : f32 to vector<4x64xf32>
    %101 = arith.maximumf %99, %100 : vector<4x64xf32>
    %cst_49 = arith.constant dense<0.000000e+00> : vector<4x16xf32>
    %102 = tpu.matmul %101, %2, %cst_49 {dimension_numbers = #tpu.dot_dimension_numbers<[1], [0], [0], [1], [0, 0, 1, 1], [], []>} : vector<4x64xf32>, vector<64x16xf32>, vector<4x16xf32> -> vector<4x16xf32>
    %103 = arith.addf %102, %11 : vector<4x16xf32>
    %104 = tpu.concatenate %25, %38, %51, %64, %77, %90, %103 in 1 : vector<4x16xf32>, vector<4x16xf32>, vector<4x16xf32>, vector<4x16xf32>, vector<4x16xf32>, vector<4x16xf32>, vector<4x16xf32> -> vector<4x112xf32>
    %c0_50 = arith.constant 0 : index
    %c0_51 = arith.constant 0 : index
    %105 = vector.load %arg9[%c0_50, %c0_51] : memref<4x112xf32, #tpu.memory_space<vmem>>, vector<4x112xf32>
    tpu.vector_store %arg9[%c0_50, %c0_51], %104 {strides = array<i32>} : memref<4x112xf32, #tpu.memory_space<vmem>>, vector<4x112xf32>,
    return
  }
  func.func @transform_0(%arg0: i32) -> (i32, i32) {
    %c0_i32 = arith.constant 0 : i32
    %c0_i32_0 = arith.constant 0 : i32
    %c0_i32_1 = arith.constant 0 : i32
    return %c0_i32, %c0_i32_0 : i32, i32
  }
  func.func @transform_1(%arg0: i32) -> (i32, i32) {
    %c0_i32 = arith.constant 0 : i32
    %c0_i32_0 = arith.constant 0 : i32
    %c0_i32_1 = arith.constant 0 : i32
    return %c0_i32, %c0_i32_0 : i32, i32
  }
  func.func @transform_2(%arg0: i32) -> (i32, i32) {
    %c0_i32 = arith.constant 0 : i32
    %c0_i32_0 = arith.constant 0 : i32
    %c0_i32_1 = arith.constant 0 : i32
    return %c0_i32, %c0_i32_0 : i32, i32
  }
  func.func @transform_3(%arg0: i32) -> (i32, i32) {
    %c0_i32 = arith.constant 0 : i32
    %c0_i32_0 = arith.constant 0 : i32
    %c0_i32_1 = arith.constant 0 : i32
    return %c0_i32, %c0_i32_0 : i32, i32
  }
  func.func @transform_4(%arg0: i32) -> (i32, i32) {
    %c0_i32 = arith.constant 0 : i32
    %c0_i32_0 = arith.constant 0 : i32
    %c0_i32_1 = arith.constant 0 : i32
    return %c0_i32, %c0_i32_0 : i32, i32
  }
  func.func @transform_5(%arg0: i32) -> (i32, i32) {
    %c0_i32 = arith.constant 0 : i32
    %c0_i32_0 = arith.constant 0 : i32
    %c0_i32_1 = arith.constant 0 : i32
    return %c0_i32, %c0_i32_0 : i32, i32
  }
  func.func @transform_6(%arg0: i32) -> (i32, i32) {
    %c0_i32 = arith.constant 0 : i32
    %c0_i32_0 = arith.constant 0 : i32
    %c0_i32_1 = arith.constant 0 : i32
    return %c0_i32, %c0_i32_0 : i32, i32
  }
  func.func @transform_7(%arg0: i32) -> (i32, i32) {
    %c0_i32 = arith.constant 0 : i32
    %c0_i32_0 = arith.constant 0 : i32
    %c0_i32_1 = arith.constant 0 : i32
    return %c0_i32, %c0_i32_0 : i32, i32
  }
  func.func @transform_8(%arg0: i32) -> (i32, i32) {
    %c0_i32 = arith.constant 0 : i32
    %c0_i32_0 = arith.constant 0 : i32
    %c0_i32_1 = arith.constant 0 : i32
    return %c0_i32, %c0_i32_0 : i32, i32
  }
}

</mosaic_0001>

<bundles_post_ra>
// kernel: tpu_custom_call.1
= control target key start
LH: loop header
LB: loop body
LE: loop exit
PB: predicated region body
PF: predicated region fallthrough
CT: control target
= control target key end

     0   :  { %13 = vsyncpa [#allocation3], 0  ;;  %s2789_s0 = inlined_call_operand.vmem [shape: f32[4,16], index: 0, kind: input, shape index: {}]   ;;  %s2790_s1 = inlined_call_operand.hbm [shape: f32[4,112], index: 1, kind: input, shape index: {}]   ;;  %s2791_s2 = inlined_call_operand.vmem [shape: f32[16,64], index: 2, kind: input, shape index: {}]   ;;  %s2792_s3 = inlined_call_operand.vmem [shape: f32[1,64], index: 3, kind: input, shape index: {}]   ;;  %s2793_s4 = inlined_call_operand.vmem [shape: f32[64,64], index: 4, kind: input, shape index: {}]   ;;  %s2794_s5 = inlined_call_operand.vmem [shape: f32[1,64], index: 5, kind: input, shape index: {}]   ;;  %s2795_s6 = inlined_call_operand.vmem [shape: f32[64,16], index: 6, kind: input, shape index: {}]   ;;  %s2796_s7 = inlined_call_operand.vmem [shape: f32[1,16], index: 7, kind: input, shape index: {}]   ;;  %s2797_s8 = inlined_call_operand.hbm [shape: f32[4,112], index: 8, kind: output, shape index: {}]  }
   0x1   :  { %14 = vsyncpa [#allocation4], 0  ;;  %s2253_s27 = smov [#allocation2]  }
   0x2   :  { %s23_s28 = sshll.u32 %s2253_s27, 4  ;;  %s24_s28 = int_to_ptr.vmem [resolvable:$true] %s23_s28 }
   0x3   :  { %s2217_s29 = scalar_lea.vmem %s24_s28, 64  ;;  %p2222_p1 = scmp.lt.s32.totalorder %s24_s28, %s24_s28 }
   0x4   :  { %p2218_p0 = scmp.ne.s32.totalorder %s24_s28, %s2217_s29  ;;  %p2223_p2 = scmp.lt.s32.totalorder %s2217_s29, %s2217_s29 }
   0x6   :  { %p2224_p3 = por %p2223_p2, %p2222_p1 }
   0x8   :  { %p2225_p4 = pnand %p2224_p3, %p2218_p0 }
   0xa   :  { %2228 = shalt.err (!%p2225_p4)
}
   0xb   :  { %26 = dma.hbm_to_vmem [thread:$0]  %s2790_s1, 64, %s24_s28, [#allocation3]  }
   0xc   :  { %2249 = dma.done.wait [#allocation3], 64  }
   0xd   :  { %2250 = vsyncadd [#allocation3], 4294967232  ;;  %v2254_v0 = vmov 0.0   ;;  %vm2255_vm0 = vmmov 0   ;;  %v2321_v1 = vld [vmem:[%s2791_s2 + $0x8] sm:$0xff]  ;;  %v2326_v2 = vld [vmem:[%s2791_s2] sm:$0xff] }
   0xe   :  { %1883 = vmatprep.subr.mxu0 %v2254_v0  ;;  %1887 = vmatprep.mubr.msk.f32.mxu0 %vm2255_vm0, %v2254_v0  ;;  %v2332_v3 = vld [vmem:[%s2789_s0] sm:$0xf]  ;;  %vm84_vm1 = vcmask 130048   ;;  %v2337_v4 = vld [vmem:[%s2793_s4 + $0x38] sm:$0xff]  ;;  %v2342_v5 = vld [vmem:[%s2793_s4 + $0x30] sm:$0xff]  ;;  %vm159_vm2 = vcmask 523264  }
   0xf   :  { %1890 = vmatprep.subr.mxu1 %v2254_v0  ;;  %1906 = vmatprep.mubr.msk.f32.mxu1 %vm2255_vm0, %v2254_v0  ;;  %v2351_v6 = vld [vmem:[%s2793_s4 + $0x28] sm:$0xff]  ;;  %v2360_v7 = vld [vmem:[%s2793_s4 + $0x20] sm:$0xff]  ;;  %v2370_v8 = vld [vmem:[%s2793_s4 + $0x18] sm:$0xff]  ;;  %s2257_s22 = smov 80   ;;  %s2258_s23 = smov 64   ;;  %vm1686_vm3 = vcmask 261120  }
  0x10   :  { %1884 = vmatpush3.msra.mxu0 %v2321_v1  ;;  %1891 = vmatpush3.msra.mxu1 %v2337_v4  ;;  %v2379_v9 = vld [vmem:[%s2793_s4 + $0x10] sm:$0xff]  ;;  %v2386_v10 = vld [vmem:[%s2793_s4 + $0x8] sm:$0xff]  ;;  %v2393_v11 = vld [vmem:[%s2793_s4] sm:$0xff]  ;;  %s2259_s24 = smov 16   ;;  %s2260_s25 = smov 96   ;;  %vm1688_vm4 = vcmask 392192  }
  0x11   :  { %1885 = vmatprep.subr.mxu0 %v2254_v0  ;;  %1892 = vmatprep.subr.mxu1 %v2254_v0  ;;  %v2399_v12 = vld [vmem:[%s2795_s6 + $0x38] sm:$0xff]  ;;  %v2404_v13 = vld [vmem:[%s2795_s6 + $0x30] sm:$0xff]  ;;  %v2412_v14 = vld [vmem:[%s2795_s6 + $0x28] sm:$0xff]  ;;  %s2261_s26 = smov 48   ;;  %s2262_s27 = smov 32   ;;  %vm1691_vm5 = vcmask 654336  }
  0x12   :  { %1886 = vmatpush3.msra.mxu0 %v2326_v2  ;;  %1893 = vmatpush3.msra.mxu1 %v2342_v5  ;;  %v2419_v15 = vld [vmem:[%s2795_s6 + $0x20] sm:$0xff]  ;;  %v2426_v16 = vld [vmem:[%s2795_s6 + $0x18] sm:$0xff]  ;;  %v2448_v22 = vld [vmem:[%s2795_s6 + $0x10] sm:$0xff]  ;;  %s2263_s28 = smov [#allocation5]   ;;  %vm1693_vm6 = vcmask 785408   ;;  %vm1695_vm7 = vcmask 912384  }
  0x13   :  { %1888 = vmatmul.mubr.msk.f32.vlgmr.msra.gmra.mxu0 %vm84_vm1, %v2332_v3  ;;  %1894 = vmatprep.subr.mxu1 %v2254_v0  ;;  %v2435_v17 = vld [vmem:[%s2792_s3] ss:$0 sm:$0xff]  ;;  %v2455_v23 = vld [vmem:[%s2795_s6 + $0x8] sm:$0xff]  ;;  %s1703_s29 = sshll.u32 %s2263_s28, 4  ;;  %s1704_s29 = int_to_ptr.vmem [resolvable:$true] %s1703_s29 }
  0x14   :  { %1909 = vmatprep.subr.mxu0 %v2254_v0  ;;  %1895 = vmatpush3.msra.mxu1 %v2351_v6  ;;  %v2462_v24 = vld [vmem:[%s2795_s6] sm:$0xff]  ;;  %s2229_s30 = scalar_lea.vmem %s1704_s29, 64  ;;  %p2234_p6 = scmp.lt.s32.totalorder %s1704_s29, %s1704_s29 }
  0x15   :  { %1925 = vmatprep.mubr.msk.f32.mxu0 %vm2255_vm0, %v2254_v0  ;;  %1896 = vmatprep.subr.mxu1 %v2254_v0  ;;  %v2469_v25 = vld [vmem:[%s2794_s5] ss:$0 sm:$0xff]  ;;  %p2230_p5 = scmp.ne.s32.totalorder %s1704_s29, %s2229_s30  ;;  %p2235_p7 = scmp.lt.s32.totalorder %s2229_s30, %s2229_s30 }
  0x16   :  { %1897 = vmatpush3.msra.mxu1 %v2360_v7  ;;  %1910 = vmatpush3.msra.mxu0 %v2399_v12  ;;  %v2494_v30 = vld [vmem:[%s2796_s7] ss:$0 sm:$0xff]  ;;  %s2256_s7 = smov 112  }
  0x17   :  { %1898 = vmatprep.subr.mxu1 %v2254_v0  ;;  %1911 = vmatprep.subr.mxu0 %v2254_v0  ;;  %v81_v31 = vld [vmem:[#allocation2] sm:$0xf]  ;;  %p2236_p8 = por %p2235_p7, %p2234_p6 }
  0x18   :  { %1899 = vmatpush3.msra.mxu1 %v2370_v8  ;;  %1912 = vmatpush3.msra.mxu0 %v2404_v13  ;;  %v2496_v33 = vmul.f32 0.01, %v81_v31 }
  0x19   :  { %1900 = vmatprep.subr.mxu1 %v2254_v0  ;;  %1913 = vmatprep.subr.mxu0 %v2254_v0  ;;  %p2237_p9 = pnand %p2236_p8, %p2230_p5 }
  0x1a   :  { %1901 = vmatpush3.msra.mxu1 %v2379_v9  ;;  %1914 = vmatpush3.msra.mxu0 %v2412_v14 }
  0x1b   :  { %1902 = vmatprep.subr.mxu1 %v2254_v0  ;;  %1915 = vmatprep.subr.mxu0 %v2254_v0 }
  0x1c   :  { %1903 = vmatpush3.msra.mxu1 %v2386_v10  ;;  %1916 = vmatpush3.msra.mxu0 %v2419_v15 }
  0x1d   :  { %1904 = vmatprep.subr.mxu1 %v2254_v0  ;;  %1917 = vmatprep.subr.mxu0 %v2254_v0 }
  0x1e   :  { %1905 = vmatpush3.msra.mxu1 %v2393_v11  ;;  %1918 = vmatpush3.msra.mxu0 %v2426_v16 }
  0x1f   :  { %1928 = vmatprep.subr.mxu1 %v2254_v0  ;;  %1919 = vmatprep.subr.mxu0 %v2254_v0 }
  0x20   :  { %1920 = vmatpush3.msra.mxu0 %v2448_v22  ;;  %532 = vrot.lane.b32.xlu0 %v2496_v33, %s2256_s7 }
  0x21   :  { %1921 = vmatprep.subr.mxu0 %v2254_v0  ;;  %984 = vrot.lane.b32.xlu1 %v2496_v33, %s2257_s22 }
  0x22   :  { %1922 = vmatpush3.msra.mxu0 %v2455_v23 }
  0x23   :  { %1923 = vmatprep.subr.mxu0 %v2254_v0 }
  0x24   :  { %1924 = vmatpush3.msra.mxu0 %v2462_v24  ;;  %758 = vrot.lane.b32.xlu0 %v2496_v33, %s2260_s25 }
  0x25   :  { %1935 = vmatprep.subr.mxu0 %v2254_v0  ;;  %1210 = vrot.lane.b32.xlu1 %v2496_v33, %s2258_s23 }
  0x28   :  { %1436 = vrot.lane.b32.xlu0 %v2496_v33, %s2261_s26 }
  0x92   :  { %v533_v49 = vpop.permute.xlu0 %532 }
  0x96   :  { %v759_v63 = vpop.permute.xlu0 %758 }
  0xd3   :  { %v154_v18 = vpop.f32.mrf.mxu0 }
  0xd4   :  { %v155_v19 = vadd.f32 %v2435_v17, %v154_v18 }
  0xd5   :  { %v1889_v20 = vpop.f32.mrf.mxu0 }
  0xd6   :  { %v158_v21 = vmax.f32 %v155_v19, 0.0 }
  0xd8   :  { %1907 = vmatmul.mubr.msk.f32.vlgmr.msra.gmra.mxu1 %vm159_vm2, %v158_v21 }
  0xd9   :  { %1929 = vmatpush3.msra.mxu1 %v2321_v1  ;;  %1932 = vmatprep.mubr.msk.f32.mxu1 %vm2255_vm0, %v2254_v0 }
  0xda   :  { %1930 = vmatprep.subr.mxu1 %v2254_v0 }
  0xdb   :  { %1931 = vmatpush3.msra.mxu1 %v2326_v2 }
  0xdc   :  { %1954 = vmatprep.subr.mxu1 %v2254_v0 }
 0x198   :  { %v229_v26 = vpop.f32.mrf.mxu1 }
 0x199   :  { %v230_v27 = vadd.f32 %v2469_v25, %v229_v26 }
 0x19a   :  { %v1908_v28 = vpop.f32.mrf.mxu1 }
 0x19b   :  { %v233_v29 = vmax.f32 %v230_v27, 0.0 }
 0x19d   :  { %1926 = vmatmul.mubr.msk.f32.vlgmr.msra.gmra.mxu0 %vm159_vm2, %v233_v29 }
 0x19e   :  { %1936 = vmatpush3.msra.mxu0 %v2337_v4  ;;  %1951 = vmatprep.mubr.msk.f32.mxu0 %vm2255_vm0, %v2254_v0 }
 0x19f   :  { %1937 = vmatprep.subr.mxu0 %v2254_v0 }
 0x1a0   :  { %1938 = vmatpush3.msra.mxu0 %v2342_v5 }
 0x1a1   :  { %1939 = vmatprep.subr.mxu0 %v2254_v0 }
 0x1a2   :  { %1940 = vmatpush3.msra.mxu0 %v2351_v6 }
 0x1a3   :  { %1941 = vmatprep.subr.mxu0 %v2254_v0 }
 0x1a4   :  { %1942 = vmatpush3.msra.mxu0 %v2360_v7 }
 0x1a5   :  { %1943 = vmatprep.subr.mxu0 %v2254_v0 }
 0x1a6   :  { %1944 = vmatpush3.msra.mxu0 %v2370_v8 }
 0x1a7   :  { %1945 = vmatprep.subr.mxu0 %v2254_v0 }
 0x1a8   :  { %1946 = vmatpush3.msra.mxu0 %v2379_v9 }
 0x1a9   :  { %1947 = vmatprep.subr.mxu0 %v2254_v0 }
 0x1aa   :  { %1948 = vmatpush3.msra.mxu0 %v2386_v10 }
 0x1ab   :  { %1949 = vmatprep.subr.mxu0 %v2254_v0 }
 0x1ac   :  { %1950 = vmatpush3.msra.mxu0 %v2393_v11 }
 0x1ad   :  { %1973 = vmatprep.subr.mxu0 %v2254_v0 }
 0x25d   :  { %v303_v32 = vpop.f32.mrf.mxu0 }
 0x25e   :  { %v2499_v34 = vadd.f32 %v2494_v30, %v303_v32 }
 0x25f   :  { %v1927_v35 = vpop.f32.mrf.mxu0 }
 0x260   :  { %v307_v36 = vadd.f32 %v2499_v34, %v2332_v3 }
 0x262   :  { %v2504_v37 = vadd.f32 %v307_v36, %v2496_v33 }
 0x264   :  { %1933 = vmatmul.mubr.msk.f32.vlgmr.msra.gmra.mxu1 %vm84_vm1, %v2504_v37 }
 0x265   :  { %1955 = vmatpush3.msra.mxu1 %v2399_v12  ;;  %1970 = vmatprep.mubr.msk.f32.mxu1 %vm2255_vm0, %v2254_v0 }
 0x266   :  { %1956 = vmatprep.subr.mxu1 %v2254_v0 }
 0x267   :  { %1957 = vmatpush3.msra.mxu1 %v2404_v13 }
 0x268   :  { %1958 = vmatprep.subr.mxu1 %v2254_v0 }
 0x269   :  { %1959 = vmatpush3.msra.mxu1 %v2412_v14 }
 0x26a   :  { %1960 = vmatprep.subr.mxu1 %v2254_v0 }
 0x26b   :  { %1961 = vmatpush3.msra.mxu1 %v2419_v15 }
 0x26c   :  { %1962 = vmatprep.subr.mxu1 %v2254_v0 }
 0x26d   :  { %1963 = vmatpush3.msra.mxu1 %v2426_v16 }
 0x26e   :  { %1964 = vmatprep.subr.mxu1 %v2254_v0 }
 0x26f   :  { %1965 = vmatpush3.msra.mxu1 %v2448_v22 }
 0x270   :  { %1966 = vmatprep.subr.mxu1 %v2254_v0 }
 0x271   :  { %1967 = vmatpush3.msra.mxu1 %v2455_v23 }
 0x272   :  { %1968 = vmatprep.subr.mxu1 %v2254_v0 }
 0x273   :  { %1969 = vmatpush3.msra.mxu1 %v2462_v24 }
 0x274   :  { %1980 = vmatprep.subr.mxu1 %v2254_v0 }
 0x324   :  { %v378_v38 = vpop.f32.mrf.mxu1 }
 0x325   :  { %v379_v39 = vadd.f32 %v2435_v17, %v378_v38 }
 0x326   :  { %v1934_v40 = vpop.f32.mrf.mxu1 }
 0x327   :  { %v382_v41 = vmax.f32 %v379_v39, 0.0 }
 0x329   :  { %1952 = vmatmul.mubr.msk.f32.vlgmr.msra.gmra.mxu0 %vm159_vm2, %v382_v41 }
 0x32a   :  { %1974 = vmatpush3.msra.mxu0 %v2321_v1  ;;  %1977 = vmatprep.mubr.msk.f32.mxu0 %vm2255_vm0, %v2254_v0 }
 0x32b   :  { %1975 = vmatprep.subr.mxu0 %v2254_v0 }
 0x32c   :  { %1976 = vmatpush3.msra.mxu0 %v2326_v2 }
 0x32d   :  { %1999 = vmatprep.subr.mxu0 %v2254_v0 }
 0x3e9   :  { %v452_v42 = vpop.f32.mrf.mxu0 }
 0x3ea   :  { %v453_v43 = vadd.f32 %v2469_v25, %v452_v42 }
 0x3eb   :  { %v1953_v44 = vpop.f32.mrf.mxu0 }
 0x3ec   :  { %v456_v45 = vmax.f32 %v453_v43, 0.0 }
 0x3ee   :  { %1971 = vmatmul.mubr.msk.f32.vlgmr.msra.gmra.mxu1 %vm159_vm2, %v456_v45 }
 0x3ef   :  { %1981 = vmatpush3.msra.mxu1 %v2337_v4  ;;  %1996 = vmatprep.mubr.msk.f32.mxu1 %vm2255_vm0, %v2254_v0 }
 0x3f0   :  { %1982 = vmatprep.subr.mxu1 %v2254_v0 }
 0x3f1   :  { %1983 = vmatpush3.msra.mxu1 %v2342_v5 }
 0x3f2   :  { %1984 = vmatprep.subr.mxu1 %v2254_v0 }
 0x3f3   :  { %1985 = vmatpush3.msra.mxu1 %v2351_v6 }
 0x3f4   :  { %1986 = vmatprep.subr.mxu1 %v2254_v0 }
 0x3f5   :  { %1987 = vmatpush3.msra.mxu1 %v2360_v7 }
 0x3f6   :  { %1988 = vmatprep.subr.mxu1 %v2254_v0 }
 0x3f7   :  { %1989 = vmatpush3.msra.mxu1 %v2370_v8 }
 0x3f8   :  { %1990 = vmatprep.subr.mxu1 %v2254_v0 }
 0x3f9   :  { %1991 = vmatpush3.msra.mxu1 %v2379_v9 }
 0x3fa   :  { %1992 = vmatprep.subr.mxu1 %v2254_v0 }
 0x3fb   :  { %1993 = vmatpush3.msra.mxu1 %v2386_v10 }
 0x3fc   :  { %1994 = vmatprep.subr.mxu1 %v2254_v0 }
 0x3fd   :  { %1995 = vmatpush3.msra.mxu1 %v2393_v11 }
 0x3fe   :  { %2018 = vmatprep.subr.mxu1 %v2254_v0 }
 0x4ae   :  { %v526_v46 = vpop.f32.mrf.mxu1 }
 0x4af   :  { %v527_v47 = vadd.f32 %v2494_v30, %v526_v46 }
 0x4b0   :  { %v1972_v48 = vpop.f32.mrf.mxu1 }
 0x4b1   :  { %1662 = vrot.lane.b32.xlu1 %v527_v47, %s2259_s24  ;;  %v530_v50 = vadd.f32 %v527_v47, %v2504_v37  ;;  %v985_v37 = vpop.permute.xlu1 %984 }
 0x4b3   :  { %v535_v51 = vadd.f32 %v533_v49, %v530_v50 }
 0x4b5   :  { %1978 = vmatmul.mubr.msk.f32.vlgmr.msra.gmra.mxu0 %vm84_vm1, %v535_v51 }
 0x4b6   :  { %2000 = vmatpush3.msra.mxu0 %v2399_v12  ;;  %2015 = vmatprep.mubr.msk.f32.mxu0 %vm2255_vm0, %v2254_v0 }
 0x4b7   :  { %2001 = vmatprep.subr.mxu0 %v2254_v0 }
 0x4b8   :  { %2002 = vmatpush3.msra.mxu0 %v2404_v13 }
 0x4b9   :  { %2003 = vmatprep.subr.mxu0 %v2254_v0 }
 0x4ba   :  { %2004 = vmatpush3.msra.mxu0 %v2412_v14 }
 0x4bb   :  { %2005 = vmatprep.subr.mxu0 %v2254_v0 }
 0x4bc   :  { %2006 = vmatpush3.msra.mxu0 %v2419_v15 }
 0x4bd   :  { %2007 = vmatprep.subr.mxu0 %v2254_v0 }
 0x4be   :  { %2008 = vmatpush3.msra.mxu0 %v2426_v16 }
 0x4bf   :  { %2009 = vmatprep.subr.mxu0 %v2254_v0 }
 0x4c0   :  { %2010 = vmatpush3.msra.mxu0 %v2448_v22 }
 0x4c1   :  { %2011 = vmatprep.subr.mxu0 %v2254_v0 }
 0x4c2   :  { %2012 = vmatpush3.msra.mxu0 %v2455_v23 }
 0x4c3   :  { %2013 = vmatprep.subr.mxu0 %v2254_v0 }
 0x4c4   :  { %2014 = vmatpush3.msra.mxu0 %v2462_v24 }
 0x4c5   :  { %2025 = vmatprep.subr.mxu0 %v2254_v0 }
 0x575   :  { %v605_v52 = vpop.f32.mrf.mxu0 }
 0x576   :  { %v606_v53 = vadd.f32 %v2435_v17, %v605_v52 }
 0x577   :  { %v1979_v54 = vpop.f32.mrf.mxu0 }
 0x578   :  { %v609_v55 = vmax.f32 %v606_v53, 0.0 }
 0x57a   :  { %1997 = vmatmul.mubr.msk.f32.vlgmr.msra.gmra.mxu1 %vm159_vm2, %v609_v55 }
 0x57b   :  { %2019 = vmatpush3.msra.mxu1 %v2321_v1  ;;  %2022 = vmatprep.mubr.msk.f32.mxu1 %vm2255_vm0, %v2254_v0 }
 0x57c   :  { %2020 = vmatprep.subr.mxu1 %v2254_v0 }
 0x57d   :  { %2021 = vmatpush3.msra.mxu1 %v2326_v2 }
 0x57e   :  { %2044 = vmatprep.subr.mxu1 %v2254_v0 }
 0x63a   :  { %v679_v56 = vpop.f32.mrf.mxu1 }
 0x63b   :  { %v680_v57 = vadd.f32 %v2469_v25, %v679_v56 }
 0x63c   :  { %v1998_v58 = vpop.f32.mrf.mxu1 }
 0x63d   :  { %v683_v59 = vmax.f32 %v680_v57, 0.0 }
 0x63f   :  { %2016 = vmatmul.mubr.msk.f32.vlgmr.msra.gmra.mxu0 %vm159_vm2, %v683_v59 }
 0x640   :  { %2026 = vmatpush3.msra.mxu0 %v2337_v4  ;;  %2041 = vmatprep.mubr.msk.f32.mxu0 %vm2255_vm0, %v2254_v0 }
 0x641   :  { %2027 = vmatprep.subr.mxu0 %v2254_v0 }
 0x642   :  { %2028 = vmatpush3.msra.mxu0 %v2342_v5 }
 0x643   :  { %2029 = vmatprep.subr.mxu0 %v2254_v0 }
 0x644   :  { %2030 = vmatpush3.msra.mxu0 %v2351_v6 }
 0x645   :  { %2031 = vmatprep.subr.mxu0 %v2254_v0 }
 0x646   :  { %2032 = vmatpush3.msra.mxu0 %v2360_v7 }
 0x647   :  { %2033 = vmatprep.subr.mxu0 %v2254_v0 }
 0x648   :  { %2034 = vmatpush3.msra.mxu0 %v2370_v8 }
 0x649   :  { %2035 = vmatprep.subr.mxu0 %v2254_v0 }
 0x64a   :  { %2036 = vmatpush3.msra.mxu0 %v2379_v9 }
 0x64b   :  { %2037 = vmatprep.subr.mxu0 %v2254_v0 }
 0x64c   :  { %2038 = vmatpush3.msra.mxu0 %v2386_v10 }
 0x64d   :  { %2039 = vmatprep.subr.mxu0 %v2254_v0 }
 0x64e   :  { %2040 = vmatpush3.msra.mxu0 %v2393_v11 }
 0x64f   :  { %2063 = vmatprep.subr.mxu0 %v2254_v0 }
 0x6ff   :  { %v753_v60 = vpop.f32.mrf.mxu0 }
 0x700   :  { %v754_v61 = vadd.f32 %v2494_v30, %v753_v60 }
 0x701   :  { %v2017_v62 = vpop.f32.mrf.mxu0 }
 0x702   :  { %1666 = vrot.lane.b32.xlu0 %v754_v61, %s2262_s27  ;;  %v757_v3 = vadd.f32 %v754_v61, %v535_v51  ;;  %v1211_v51 = vpop.permute.xlu1 %1210 }
 0x704   :  { %v761_v18 = vadd.f32 %v759_v63, %v757_v3 }
 0x706   :  { %2023 = vmatmul.mubr.msk.f32.vlgmr.msra.gmra.mxu1 %vm84_vm1, %v761_v18 }
 0x707   :  { %2045 = vmatpush3.msra.mxu1 %v2399_v12  ;;  %2060 = vmatprep.mubr.msk.f32.mxu1 %vm2255_vm0, %v2254_v0 }
 0x708   :  { %2046 = vmatprep.subr.mxu1 %v2254_v0 }
 0x709   :  { %2047 = vmatpush3.msra.mxu1 %v2404_v13 }
 0x70a   :  { %2048 = vmatprep.subr.mxu1 %v2254_v0 }
 0x70b   :  { %2049 = vmatpush3.msra.mxu1 %v2412_v14 }
 0x70c   :  { %2050 = vmatprep.subr.mxu1 %v2254_v0 }
 0x70d   :  { %2051 = vmatpush3.msra.mxu1 %v2419_v15 }
 0x70e   :  { %2052 = vmatprep.subr.mxu1 %v2254_v0 }
 0x70f   :  { %2053 = vmatpush3.msra.mxu1 %v2426_v16 }
 0x710   :  { %2054 = vmatprep.subr.mxu1 %v2254_v0 }
 0x711   :  { %2055 = vmatpush3.msra.mxu1 %v2448_v22 }
 0x712   :  { %2056 = vmatprep.subr.mxu1 %v2254_v0 }
 0x713   :  { %2057 = vmatpush3.msra.mxu1 %v2455_v23 }
 0x714   :  { %2058 = vmatprep.subr.mxu1 %v2254_v0 }
 0x715   :  { %2059 = vmatpush3.msra.mxu1 %v2462_v24 }
 0x716   :  { %2070 = vmatprep.subr.mxu1 %v2254_v0 }
 0x7c6   :  { %v831_v19 = vpop.f32.mrf.mxu1 }
 0x7c7   :  { %v832_v20 = vadd.f32 %v2435_v17, %v831_v19 }
 0x7c8   :  { %v2024_v21 = vpop.f32.mrf.mxu1 }
 0x7c9   :  { %v835_v26 = vmax.f32 %v832_v20, 0.0 }
 0x7cb   :  { %2042 = vmatmul.mubr.msk.f32.vlgmr.msra.gmra.mxu0 %vm159_vm2, %v835_v26 }
 0x7cc   :  { %2064 = vmatpush3.msra.mxu0 %v2321_v1  ;;  %2067 = vmatprep.mubr.msk.f32.mxu0 %vm2255_vm0, %v2254_v0 }
 0x7cd   :  { %2065 = vmatprep.subr.mxu0 %v2254_v0 }
 0x7ce   :  { %2066 = vmatpush3.msra.mxu0 %v2326_v2 }
 0x7cf   :  { %2089 = vmatprep.subr.mxu0 %v2254_v0 }
 0x88b   :  { %v905_v27 = vpop.f32.mrf.mxu0 }
 0x88c   :  { %v906_v28 = vadd.f32 %v2469_v25, %v905_v27 }
 0x88d   :  { %v2043_v29 = vpop.f32.mrf.mxu0 }
 0x88e   :  { %v909_v31 = vmax.f32 %v906_v28, 0.0 }
 0x890   :  { %2061 = vmatmul.mubr.msk.f32.vlgmr.msra.gmra.mxu1 %vm159_vm2, %v909_v31 }
 0x891   :  { %2071 = vmatpush3.msra.mxu1 %v2337_v4  ;;  %2086 = vmatprep.mubr.msk.f32.mxu1 %vm2255_vm0, %v2254_v0 }
 0x892   :  { %2072 = vmatprep.subr.mxu1 %v2254_v0 }
 0x893   :  { %2073 = vmatpush3.msra.mxu1 %v2342_v5 }
 0x894   :  { %2074 = vmatprep.subr.mxu1 %v2254_v0 }
 0x895   :  { %2075 = vmatpush3.msra.mxu1 %v2351_v6 }
 0x896   :  { %2076 = vmatprep.subr.mxu1 %v2254_v0 }
 0x897   :  { %2077 = vmatpush3.msra.mxu1 %v2360_v7 }
 0x898   :  { %2078 = vmatprep.subr.mxu1 %v2254_v0 }
 0x899   :  { %2079 = vmatpush3.msra.mxu1 %v2370_v8 }
 0x89a   :  { %2080 = vmatprep.subr.mxu1 %v2254_v0 }
 0x89b   :  { %2081 = vmatpush3.msra.mxu1 %v2379_v9 }
 0x89c   :  { %2082 = vmatprep.subr.mxu1 %v2254_v0 }
 0x89d   :  { %2083 = vmatpush3.msra.mxu1 %v2386_v10 }
 0x89e   :  { %2084 = vmatprep.subr.mxu1 %v2254_v0 }
 0x89f   :  { %2085 = vmatpush3.msra.mxu1 %v2393_v11 }
 0x8a0   :  { %2108 = vmatprep.subr.mxu1 %v2254_v0 }
 0x950   :  { %v979_v32 = vpop.f32.mrf.mxu1 }
 0x951   :  { %v980_v33 = vadd.f32 %v2494_v30, %v979_v32 }
 0x952   :  { %v2062_v35 = vpop.f32.mrf.mxu1 }
 0x953   :  { %v983_v36 = vadd.f32 %v980_v33, %v761_v18  ;;  %1670 = vrot.lane.b32.xlu1 %v980_v33, %s2261_s26 }
 0x955   :  { %v987_v38 = vadd.f32 %v985_v37, %v983_v36 }
 0x957   :  { %2068 = vmatmul.mubr.msk.f32.vlgmr.msra.gmra.mxu0 %vm84_vm1, %v987_v38 }
 0x958   :  { %2090 = vmatpush3.msra.mxu0 %v2399_v12  ;;  %2105 = vmatprep.mubr.msk.f32.mxu0 %vm2255_vm0, %v2254_v0 }
 0x959   :  { %2091 = vmatprep.subr.mxu0 %v2254_v0 }
 0x95a   :  { %2092 = vmatpush3.msra.mxu0 %v2404_v13 }
 0x95b   :  { %2093 = vmatprep.subr.mxu0 %v2254_v0 }
 0x95c   :  { %2094 = vmatpush3.msra.mxu0 %v2412_v14 }
 0x95d   :  { %2095 = vmatprep.subr.mxu0 %v2254_v0 }
 0x95e   :  { %2096 = vmatpush3.msra.mxu0 %v2419_v15 }
 0x95f   :  { %2097 = vmatprep.subr.mxu0 %v2254_v0 }
 0x960   :  { %2098 = vmatpush3.msra.mxu0 %v2426_v16 }
 0x961   :  { %2099 = vmatprep.subr.mxu0 %v2254_v0 }
 0x962   :  { %2100 = vmatpush3.msra.mxu0 %v2448_v22 }
 0x963   :  { %2101 = vmatprep.subr.mxu0 %v2254_v0 }
 0x964   :  { %2102 = vmatpush3.msra.mxu0 %v2455_v23 }
 0x965   :  { %2103 = vmatprep.subr.mxu0 %v2254_v0 }
 0x966   :  { %2104 = vmatpush3.msra.mxu0 %v2462_v24 }
 0x967   :  { %2115 = vmatprep.subr.mxu0 %v2254_v0 }
 0xa17   :  { %v1057_v39 = vpop.f32.mrf.mxu0 }
 0xa18   :  { %v1058_v40 = vadd.f32 %v2435_v17, %v1057_v39 }
 0xa19   :  { %v2069_v41 = vpop.f32.mrf.mxu0 }
 0xa1a   :  { %v1061_v42 = vmax.f32 %v1058_v40, 0.0 }
 0xa1c   :  { %2087 = vmatmul.mubr.msk.f32.vlgmr.msra.gmra.mxu1 %vm159_vm2, %v1061_v42 }
 0xa1d   :  { %2109 = vmatpush3.msra.mxu1 %v2321_v1  ;;  %2112 = vmatprep.mubr.msk.f32.mxu1 %vm2255_vm0, %v2254_v0 }
 0xa1e   :  { %2110 = vmatprep.subr.mxu1 %v2254_v0 }
 0xa1f   :  { %2111 = vmatpush3.msra.mxu1 %v2326_v2 }
 0xa20   :  { %2134 = vmatprep.subr.mxu1 %v2254_v0 }
 0xadc   :  { %v1131_v43 = vpop.f32.mrf.mxu1 }
 0xadd   :  { %v1132_v44 = vadd.f32 %v2469_v25, %v1131_v43 }
 0xade   :  { %v2088_v45 = vpop.f32.mrf.mxu1 }
 0xadf   :  { %v1135_v46 = vmax.f32 %v1132_v44, 0.0 }
 0xae1   :  { %2106 = vmatmul.mubr.msk.f32.vlgmr.msra.gmra.mxu0 %vm159_vm2, %v1135_v46 }
 0xae2   :  { %2116 = vmatpush3.msra.mxu0 %v2337_v4  ;;  %2131 = vmatprep.mubr.msk.f32.mxu0 %vm2255_vm0, %v2254_v0 }
 0xae3   :  { %2117 = vmatprep.subr.mxu0 %v2254_v0 }
 0xae4   :  { %2118 = vmatpush3.msra.mxu0 %v2342_v5 }
 0xae5   :  { %2119 = vmatprep.subr.mxu0 %v2254_v0 }
 0xae6   :  { %2120 = vmatpush3.msra.mxu0 %v2351_v6 }
 0xae7   :  { %2121 = vmatprep.subr.mxu0 %v2254_v0 }
 0xae8   :  { %2122 = vmatpush3.msra.mxu0 %v2360_v7 }
 0xae9   :  { %2123 = vmatprep.subr.mxu0 %v2254_v0 }
 0xaea   :  { %2124 = vmatpush3.msra.mxu0 %v2370_v8 }
 0xaeb   :  { %2125 = vmatprep.subr.mxu0 %v2254_v0 }
 0xaec   :  { %2126 = vmatpush3.msra.mxu0 %v2379_v9 }
 0xaed   :  { %2127 = vmatprep.subr.mxu0 %v2254_v0 }
 0xaee   :  { %2128 = vmatpush3.msra.mxu0 %v2386_v10 }
 0xaef   :  { %2129 = vmatprep.subr.mxu0 %v2254_v0 }
 0xaf0   :  { %2130 = vmatpush3.msra.mxu0 %v2393_v11 }
 0xaf1   :  { %2153 = vmatprep.subr.mxu0 %v2254_v0 }
 0xba1   :  { %v1205_v47 = vpop.f32.mrf.mxu0 }
 0xba2   :  { %v1206_v48 = vadd.f32 %v2494_v30, %v1205_v47 }
 0xba3   :  { %v2107_v49 = vpop.f32.mrf.mxu0 }
 0xba4   :  { %v1209_v50 = vadd.f32 %v1206_v48, %v987_v38  ;;  %1674 = vrot.lane.b32.xlu0 %v1206_v48, %s2258_s23 }
 0xba6   :  { %v1213_v52 = vadd.f32 %v1211_v51, %v1209_v50 }
 0xba8   :  { %2113 = vmatmul.mubr.msk.f32.vlgmr.msra.gmra.mxu1 %vm84_vm1, %v1213_v52 }
 0xba9   :  { %2135 = vmatpush3.msra.mxu1 %v2399_v12  ;;  %2150 = vmatprep.mubr.msk.f32.mxu1 %vm2255_vm0, %v2254_v0 }
 0xbaa   :  { %2136 = vmatprep.subr.mxu1 %v2254_v0 }
 0xbab   :  { %2137 = vmatpush3.msra.mxu1 %v2404_v13 }
 0xbac   :  { %2138 = vmatprep.subr.mxu1 %v2254_v0 }
 0xbad   :  { %2139 = vmatpush3.msra.mxu1 %v2412_v14 }
 0xbae   :  { %2140 = vmatprep.subr.mxu1 %v2254_v0 }
 0xbaf   :  { %2141 = vmatpush3.msra.mxu1 %v2419_v15 }
 0xbb0   :  { %2142 = vmatprep.subr.mxu1 %v2254_v0 }
 0xbb1   :  { %2143 = vmatpush3.msra.mxu1 %v2426_v16 }
 0xbb2   :  { %2144 = vmatprep.subr.mxu1 %v2254_v0 }
 0xbb3   :  { %2145 = vmatpush3.msra.mxu1 %v2448_v22 }
 0xbb4   :  { %2146 = vmatprep.subr.mxu1 %v2254_v0 }
 0xbb5   :  { %2147 = vmatpush3.msra.mxu1 %v2455_v23 }
 0xbb6   :  { %2148 = vmatprep.subr.mxu1 %v2254_v0 }
 0xbb7   :  { %2149 = vmatpush3.msra.mxu1 %v2462_v24 }
 0xbb8   :  { %2160 = vmatprep.subr.mxu1 %v2254_v0 }
 0xc68   :  { %v1283_v53 = vpop.f32.mrf.mxu1 }
 0xc69   :  { %v1284_v54 = vadd.f32 %v2435_v17, %v1283_v53 }
 0xc6a   :  { %v2114_v55 = vpop.f32.mrf.mxu1 }
 0xc6b   :  { %v1287_v56 = vmax.f32 %v1284_v54, 0.0 }
 0xc6d   :  { %2132 = vmatmul.mubr.msk.f32.vlgmr.msra.gmra.mxu0 %vm159_vm2, %v1287_v56 }
 0xc6e   :  { %2154 = vmatpush3.msra.mxu0 %v2321_v1  ;;  %2157 = vmatprep.mubr.msk.f32.mxu0 %vm2255_vm0, %v2254_v0 }
 0xc6f   :  { %2155 = vmatprep.subr.mxu0 %v2254_v0 }
 0xc70   :  { %2156 = vmatpush3.msra.mxu0 %v2326_v2 }
 0xc71   :  { %2179 = vmatprep.subr.mxu0 %v2254_v0 }
 0xd2d   :  { %v1357_v57 = vpop.f32.mrf.mxu0 }
 0xd2e   :  { %v1358_v58 = vadd.f32 %v2469_v25, %v1357_v57 }
 0xd2f   :  { %v2133_v59 = vpop.f32.mrf.mxu0 }
 0xd30   :  { %v1361_v60 = vmax.f32 %v1358_v58, 0.0 }
 0xd32   :  { %2151 = vmatmul.mubr.msk.f32.vlgmr.msra.gmra.mxu1 %vm159_vm2, %v1361_v60 }
 0xd33   :  { %2161 = vmatpush3.msra.mxu1 %v2337_v4  ;;  %2176 = vmatprep.mubr.msk.f32.mxu1 %vm2255_vm0, %v2254_v0 }
 0xd34   :  { %2162 = vmatprep.subr.mxu1 %v2254_v0 }
 0xd35   :  { %2163 = vmatpush3.msra.mxu1 %v2342_v5 }
 0xd36   :  { %2164 = vmatprep.subr.mxu1 %v2254_v0 }
 0xd37   :  { %2165 = vmatpush3.msra.mxu1 %v2351_v6  ;;  %v1437_v6 = vpop.permute.xlu0 %1436 }
 0xd38   :  { %2166 = vmatprep.subr.mxu1 %v2254_v0 }
 0xd39   :  { %2167 = vmatpush3.msra.mxu1 %v2360_v7 }
 0xd3a   :  { %2168 = vmatprep.subr.mxu1 %v2254_v0 }
 0xd3b   :  { %2169 = vmatpush3.msra.mxu1 %v2370_v8 }
 0xd3c   :  { %2170 = vmatprep.subr.mxu1 %v2254_v0 }
 0xd3d   :  { %2171 = vmatpush3.msra.mxu1 %v2379_v9 }
 0xd3e   :  { %2172 = vmatprep.subr.mxu1 %v2254_v0 }
 0xd3f   :  { %2173 = vmatpush3.msra.mxu1 %v2386_v10 }
 0xd40   :  { %2174 = vmatprep.subr.mxu1 %v2254_v0 }
 0xd41   :  { %2175 = vmatpush3.msra.mxu1 %v2393_v11 }
 0xdf2   :  { %v1431_v1 = vpop.f32.mrf.mxu1 }
 0xdf3   :  { %v1432_v2 = vadd.f32 %v2494_v30, %v1431_v1 }
 0xdf4   :  { %v2152_v4 = vpop.f32.mrf.mxu1 }
 0xdf5   :  { %v1435_v5 = vadd.f32 %v1432_v2, %v1213_v52  ;;  %1678 = vrot.lane.b32.xlu1 %v1432_v2, %s2257_s22 }
 0xdf7   :  { %v1439_v7 = vadd.f32 %v1437_v6, %v1435_v5 }
 0xdf9   :  { %2158 = vmatmul.mubr.msk.f32.vlgmr.msra.gmra.mxu0 %vm84_vm1, %v1439_v7 }
 0xdfa   :  { %2180 = vmatpush3.msra.mxu0 %v2399_v12  ;;  %2195 = vmatprep.mubr.msk.f32.mxu0 %vm2255_vm0, %v2254_v0 }
 0xdfb   :  { %2181 = vmatprep.subr.mxu0 %v2254_v0 }
 0xdfc   :  { %2182 = vmatpush3.msra.mxu0 %v2404_v13 }
 0xdfd   :  { %2183 = vmatprep.subr.mxu0 %v2254_v0 }
 0xdfe   :  { %2184 = vmatpush3.msra.mxu0 %v2412_v14 }
 0xdff   :  { %2185 = vmatprep.subr.mxu0 %v2254_v0 }
 0xe00   :  { %2186 = vmatpush3.msra.mxu0 %v2419_v15 }
 0xe01   :  { %2187 = vmatprep.subr.mxu0 %v2254_v0 }
 0xe02   :  { %2188 = vmatpush3.msra.mxu0 %v2426_v16 }
 0xe03   :  { %2189 = vmatprep.subr.mxu0 %v2254_v0 }
 0xe04   :  { %2190 = vmatpush3.msra.mxu0 %v2448_v22 }
 0xe05   :  { %2191 = vmatprep.subr.mxu0 %v2254_v0 }
 0xe06   :  { %2192 = vmatpush3.msra.mxu0 %v2455_v23  ;;  %v1663_v23 = vpop.permute.xlu1 %1662 }
 0xe07   :  { %2193 = vmatprep.subr.mxu0 %v2254_v0  ;;  %v1685_v61 = vsel %vm84_vm1, %v2499_v34, %v1663_v23 }
 0xe08   :  { %2194 = vmatpush3.msra.mxu0 %v2462_v24  ;;  %v1667_v24 = vpop.permute.xlu0 %1666 }
 0xe0c   :  { %v1675_v62 = vpop.permute.xlu0 %1674 }
 0xeb9   :  { %v1509_v8 = vpop.f32.mrf.mxu0 }
 0xeba   :  { %v1510_v9 = vadd.f32 %v2435_v17, %v1509_v8  ;;  %v1671_v17 = vpop.permute.xlu1 %1670 }
 0xebb   :  { %v2159_v10 = vpop.f32.mrf.mxu0 }
 0xebc   :  { %v1513_v11 = vmax.f32 %v1510_v9, 0.0 }
 0xebe   :  { %2177 = vmatmul.mubr.msk.f32.vlgmr.msra.gmra.mxu1 %vm159_vm2, %v1513_v11  ;;  %v1679_v63 = vpop.permute.xlu1 %1678 }
 0xf7e   :  { %v1583_v12 = vpop.f32.mrf.mxu1 }
 0xf7f   :  { %v1584_v13 = vadd.f32 %v2469_v25, %v1583_v12  ;;  %v1687_v25 = vsel %vm1686_vm3, %v1685_v61, %v1667_v24 }
 0xf80   :  { %v2178_v14 = vpop.f32.mrf.mxu1  ;;  %v1689_v3 = vsel %vm1688_vm4, %v1687_v25, %v1671_v17 }
 0xf81   :  { %v1587_v15 = vmax.f32 %v1584_v13, 0.0 }
 0xf83   :  { %2196 = vmatmul.mubr.msk.f32.vlgmr.msra.gmra.mxu0 %vm159_vm2, %v1587_v15 }
0x1043   :  { %v1657_v16 = vpop.f32.mrf.mxu0 }
0x1044   :  { %v1658_v22 = vadd.f32 %v2494_v30, %v1657_v16  ;;  %v1690_v30 = vsel %vm159_vm2, %v1689_v3, %v1675_v62 }
0x1045   :  { %v2197_v0 = vpop.f32.mrf.mxu0  ;;  %v1692_v18 = vsel %vm1691_vm5, %v1690_v30, %v1679_v63 }
0x1046   :  { %1682 = vrot.lane.b32.xlu0 %v1658_v22, %s2260_s25 }
0x10b8   :  { %v1683_v19 = vpop.permute.xlu0 %1682 }
0x10b9   :  { %v1694_v20 = vsel %vm1693_vm6, %v1692_v18, %v1683_v19 }
0x10ba   :  { %1696 = vst.msk [vmem:[#allocation5] sm:$0xf] %vm1695_vm7, %v1694_v20 }
0x10bb   :  { %2240 = shalt.err (!%p2237_p9)
}
0x10bc   :  { %1706 = dma.vmem_to_hbm [thread:$0]  %s1704_s29, 64, %s2797_s8, [#allocation4]  }
0x10bd   :  { %2251 = dma.done.wait [#allocation4], 64  }
0x10be   :  { %2252 = vsyncadd [#allocation4], 4294967232 }
0x10bf   :  { %1710 = vsyncpa [#allocation3], 1 }
0x10c0   :  { %1711 = vsyncpa [#allocation4], 1 }

</bundles_post_ra>
